<compile_context>
chip_gen: v7x
topology: tpu7x:2x2x1
jax: 0.10.0
libtpu: 0.0.40
codegen_flags: <defaults>
</compile_context>

<pallas_src>
import jax
import jax.numpy as jnp
from jax.experimental import pallas as pl
from jax.experimental.pallas import tpu as pltpu


# ----------------------------------------------------------------------------
# Pallas kernel: one lane-dense GEMM tile of a 4x4/stride-2 conv
#   acc (Cout, MB) f32 = W (Cout, K) bf16 @ patches (K, MB) bf16
# plus optional fused LeakyReLU and per-tile BatchNorm partial sums.
# ----------------------------------------------------------------------------
def _make_gemm_kernel(act, with_stats, neg_slope=0.2):
    def kernel(w_ref, x_ref, *out_refs):
        o_ref = out_refs[0]
        acc = jnp.dot(w_ref[...], x_ref[...],
                      preferred_element_type=jnp.float32)          # (Cout, MB) f32

        if with_stats:
            st_ref = out_refs[1]                                    # (Cout, 2) f32
            st_ref[:, 0:1] = jnp.sum(acc, axis=1, keepdims=True)
            st_ref[:, 1:2] = jnp.sum(acc * acc, axis=1, keepdims=True)

        if act == "leaky":
            acc = jnp.where(acc >= 0.0, acc, neg_slope * acc)

        o_ref[...] = acc.astype(o_ref.dtype)

    return kernel


def _pick_m_block(m_total, target=1024, min_steps=4):
    """Lane-dense (multiple-of-128) tile of the flattened N*OH*OW axis.

    Prefers the largest tile <= `target` that still leaves >= `min_steps` grid
    steps (so both v7x TensorCores get pipeline depth >= 2); tiny layers run as
    a single full-extent block.
    """
    if m_total <= 512 or m_total % 128:
        return m_total
    divs = [d for d in range(128, m_total + 1, 128) if m_total % d == 0]
    good = [d for d in divs if d <= target and m_total // d >= min_steps]
    if good:
        return max(good)
    ok = [d for d in divs if d <= target]
    return max(ok) if ok else min(divs)


def _conv_gemm(patches, w_k, *, act=None, with_stats=False, neg_slope=0.2):
    """patches (K, M) bf16, w_k (Cout, K) bf16 -> (y (Cout, M) f32, stats|None)."""
    k_dim, m_total = patches.shape
    c_out = w_k.shape[0]
    mb = _pick_m_block(m_total)
    grid = (m_total // mb,)

    y_shape = jax.ShapeDtypeStruct((c_out, m_total), jnp.float32)
    y_spec = pl.BlockSpec((c_out, mb), lambda m: (0, m))
    if with_stats:
        out_shape = (y_shape,
                     jax.ShapeDtypeStruct((grid[0], c_out, 2), jnp.float32))
        out_specs = (y_spec, pl.BlockSpec((None, c_out, 2), lambda m: (m, 0, 0)))
    else:
        out_shape = y_shape
        out_specs = y_spec

    res = pl.pallas_call(
        _make_gemm_kernel(act, with_stats, neg_slope),
        out_shape=out_shape,
        grid=grid,
        in_specs=[
            pl.BlockSpec((c_out, k_dim), lambda m: (0, 0)),   # weights (resident)
            pl.BlockSpec((k_dim, mb), lambda m: (0, m)),      # one lane-dense M tile
        ],
        out_specs=out_specs,
        compiler_params=pltpu.CompilerParams(
            dimension_semantics=("parallel",),    # megacore-shard the M tiles
            vmem_limit_bytes=32 * 1024 * 1024,    # explicit: v5e scoped default is 16 MiB
        ),
    )(w_k, patches)

    if with_stats:
        y, st = res
        return y, jnp.sum(st, axis=0)             # (Cout, 2) global sums
    return res, None


# ----------------------------------------------------------------------------
# XLA prep: channel-major patch matrix + weight layout for the transposed GEMM
# ----------------------------------------------------------------------------
def _im2col_T(a_cnhw):
    """(Cin, N, H, W) -> bf16 patch matrix (16*Cin, N*OH*OW) for 4x4/s2/p1 conv.

    K order = (kh, kw, cin); M order = (n, oh, ow).  Any preceding per-channel
    affine / LeakyReLU fuses into this pad+gather fusion.
    """
    c_in, n, h, w = a_cnhw.shape
    oh, ow = h // 2, w // 2
    ap = jnp.pad(a_cnhw, ((0, 0), (0, 0), (1, 1), (1, 1)))
    taps = [ap[:, :, kh:kh + 2 * oh:2, kw:kw + 2 * ow:2]
            for kh in range(4) for kw in range(4)]              # 16 x (Cin,N,OH,OW)
    p = jnp.stack(taps, axis=0).astype(jnp.bfloat16)            # (16,Cin,N,OH,OW)
    return p.reshape(16 * c_in, n * oh * ow), oh, ow


def _w_gemm(w_pt):
    """PyTorch conv weight (Cout, Cin, 4, 4) -> (Cout, 16*Cin) bf16, K=(kh,kw,cin)."""
    c_out = w_pt.shape[0]
    return jnp.transpose(w_pt, (0, 2, 3, 1)).reshape(c_out, -1).astype(jnp.bfloat16)


# ----------------------------------------------------------------------------
# Full forward pass
# ----------------------------------------------------------------------------
def netd_forward(x_nchw, params, eps=1e-5, neg_slope=0.2):
    x = x_nchw.astype(jnp.float32)
    n = x.shape[0]

    def leaky(v):
        return jnp.where(v >= 0.0, v, neg_slope * v)

    # Layer 1: conv + LeakyReLU (fused in-kernel), no BN.
    a = jnp.transpose(x, (1, 0, 2, 3))                      # channel-major (C,N,H,W)
    p, oh, ow = _im2col_T(a)
    y, _ = _conv_gemm(p, _w_gemm(params["w1"]), act="leaky")
    h = y.reshape(-1, n, oh, ow)                            # (ndf, N, 32, 32) f32

    # Layers 2-4: conv + per-tile BN partial sums in-kernel; global affine +
    # LeakyReLU applied on the 1x-sized activation (fuses into the next prep).
    for wname, gname, bname in (("w2", "g2", "b2"),
                                ("w3", "g3", "b3"),
                                ("w4", "g4", "b4")):
        p, oh, ow = _im2col_T(h)
        y, st = _conv_gemm(p, _w_gemm(params[wname]), with_stats=True)
        cnt = y.shape[1]                                    # N*OH*OW (static)
        mean = st[:, 0] / cnt
        var = jnp.maximum(st[:, 1] / cnt - mean * mean, 0.0)   # biased variance
        scale = params[gname] * jax.lax.rsqrt(var + eps)
        shift = params[bname] - mean * scale
        h = leaky(y * scale[:, None] + shift[:, None]).reshape(-1, n, oh, ow)

    # Layer 5: 4x4 "valid" conv -> 1 channel + sigmoid.  Tiny (N x 16*8ndf) dot,
    # launch-overhead bound -> plain JAX per the perf review.
    logits = jnp.einsum("cnij,cij->n", h, params["w5"][0],
                        precision=jax.lax.Precision.HIGHEST)
    return jax.nn.sigmoid(logits)


# ----------------------------------------------------------------------------
# Pure-JAX reference (for correctness checking only)
# ----------------------------------------------------------------------------
def netd_reference(x_nchw, params, eps=1e-5, neg_slope=0.2):
    x = jnp.transpose(x_nchw, (0, 2, 3, 1)).astype(jnp.float32)

    def conv(a, w, stride, pad):
        return jax.lax.conv_general_dilated(
            a, jnp.transpose(w, (2, 3, 1, 0)), (stride, stride),
            [(pad, pad), (pad, pad)],
            dimension_numbers=("NHWC", "HWIO", "NHWC"),
            precision=jax.lax.Precision.HIGHEST)

    def leaky(v):
        return jnp.where(v >= 0.0, v, neg_slope * v)

    def bn(v, g, b):
        m = jnp.mean(v, axis=(0, 1, 2))
        va = jnp.mean((v - m) ** 2, axis=(0, 1, 2))
        return (v - m) * jax.lax.rsqrt(va + eps) * g + b

    h = leaky(conv(x, params["w1"], 2, 1))
    h = leaky(bn(conv(h, params["w2"], 2, 1), params["g2"], params["b2"]))
    h = leaky(bn(conv(h, params["w3"], 2, 1), params["g3"], params["b3"]))
    h = leaky(bn(conv(h, params["w4"], 2, 1), params["g4"], params["b4"]))
    h = conv(h, params["w5"], 1, 0)
    return jax.nn.sigmoid(h).reshape(-1)


# ----------------------------------------------------------------------------
# Params (DCGAN-style init: conv ~ N(0, 0.02), BN gamma=1 / beta=0)
# ----------------------------------------------------------------------------
def init_params(key, nc=3, ndf=8):
    ks = jax.random.split(key, 5)

    def w(k, cout, cin):
        return 0.02 * jax.random.normal(k, (cout, cin, 4, 4), dtype=jnp.float32)

    return {
        "w1": w(ks[0], ndf, nc),
        "w2": w(ks[1], ndf * 2, ndf),
        "g2": jnp.ones((ndf * 2,), jnp.float32), "b2": jnp.zeros((ndf * 2,), jnp.float32),
        "w3": w(ks[2], ndf * 4, ndf * 2),
        "g3": jnp.ones((ndf * 4,), jnp.float32), "b3": jnp.zeros((ndf * 4,), jnp.float32),
        "w4": w(ks[3], ndf * 8, ndf * 4),
        "g4": jnp.ones((ndf * 8,), jnp.float32), "b4": jnp.zeros((ndf * 8,), jnp.float32),
        "w5": w(ks[4], 1, ndf * 8),
    }


if __name__ == "__main__":
    key = jax.random.PRNGKey(0)
    k_x, k_p = jax.random.split(key)

    # imageSize=64 is required by the final 4x4 valid conv; keep batch/ndf small.
    batch, nc, ndf, image_size = 2, 3, 8, 64
    x = jax.random.normal(k_x, (batch, nc, image_size, image_size), dtype=jnp.float32)
    params = init_params(k_p, nc=nc, ndf=ndf)

    out = jax.block_until_ready(jax.jit(netd_forward)(x, params))

    assert out.shape == (batch,), out.shape
    assert bool(jnp.all(jnp.isfinite(out)))
    assert bool(jnp.all((out >= 0.0) & (out <= 1.0)))   # sigmoid range

    ref = jax.block_until_ready(jax.jit(netd_reference)(x, params))
    err = float(jnp.max(jnp.abs(out - ref)))
    # bf16 MXU operands (per perf review) vs an all-f32 HIGHEST-precision reference.
    assert err < 2e-2, f"mismatch vs reference: {err}"

    print("KERNEL_OK")
</pallas_src>

<mosaic_0001>
module attributes {stable_mosaic.version = 11 : i64} {
  func.func @kernel(%arg0: i32, %arg1: memref<8x48xbf16, #tpu.memory_space<vmem>>, %arg2: memref<48x512xbf16, #tpu.memory_space<vmem>>, %arg3: memref<8x512xf32, #tpu.memory_space<vmem>>) attributes {dimension_semantics = [#tpu.dimension_semantics<parallel>], iteration_bounds = array<i64: 4>, scalar_prefetch = 0 : i64, scratch_operands = 0 : i64, tpu.core_type = #tpu.core_type<tc>, window_params = [{pipeline_mode = #tpu.pipeline_mode<synchronous>, transform_indices = @transform_0, window_bounds = array<i64: 8, 48>}, {transform_indices = @transform_1, window_bounds = array<i64: 48, 512>}, {transform_indices = @transform_2, window_bounds = array<i64: 8, 512>}]} {
    %c0 = arith.constant 0 : index
    %c0_0 = arith.constant 0 : index
    %0 = vector.load %arg1[%c0, %c0_0] : memref<8x48xbf16, #tpu.memory_space<vmem>>, vector<8x48xbf16>
    %c0_1 = arith.constant 0 : index
    %c0_2 = arith.constant 0 : index
    %1 = vector.load %arg2[%c0_1, %c0_2] : memref<48x512xbf16, #tpu.memory_space<vmem>>, vector<48x512xbf16>
    %cst = arith.constant dense<0.000000e+00> : vector<8x512xf32>
    %2 = tpu.matmul %0, %1, %cst {dimension_numbers = #tpu.dot_dimension_numbers<[1], [0], [0], [1], [0, 0, 1, 1], [], []>} : vector<8x48xbf16>, vector<48x512xbf16>, vector<8x512xf32> -> vector<8x512xf32>
    %cst_3 = arith.constant 0.000000e+00 : f32
    %3 = vector.broadcast %cst_3 : f32 to vector<8x512xf32>
    %4 = arith.cmpf oge, %2, %3 : vector<8x512xf32>
    %cst_4 = arith.constant 2.000000e-01 : f32
    %5 = vector.broadcast %cst_4 : f32 to vector<8x512xf32>
    %6 = arith.mulf %5, %2 : vector<8x512xf32>
    %7 = arith.select %4, %2, %6 : vector<8x512xi1>, vector<8x512xf32>
    %c0_5 = arith.constant 0 : index
    %c0_6 = arith.constant 0 : index
    %8 = vector.load %arg3[%c0_5, %c0_6] : memref<8x512xf32, #tpu.memory_space<vmem>>, vector<8x512xf32>
    tpu.vector_store %arg3[%c0_5, %c0_6], %7 {strides = array<i32>} : memref<8x512xf32, #tpu.memory_space<vmem>>, vector<8x512xf32>,
    return
  }
  func.func @transform_0(%arg0: i32) -> (i32, i32) {
    %c0_i32 = arith.constant 0 : i32
    %c0_i32_0 = arith.constant 0 : i32
    %c0_i32_1 = arith.constant 0 : i32
    return %c0_i32, %c0_i32_0 : i32, i32
  }
  func.func @transform_1(%arg0: i32) -> (i32, i32) {
    %c0_i32 = arith.constant 0 : i32
    %c0_i32_0 = arith.constant 0 : i32
    return %c0_i32, %arg0 : i32, i32
  }
  func.func @transform_2(%arg0: i32) -> (i32, i32) {
    %c0_i32 = arith.constant 0 : i32
    %c0_i32_0 = arith.constant 0 : i32
    return %c0_i32, %arg0 : i32, i32
  }
}

module attributes {stable_mosaic.version = 11 : i64} {
  func.func @kernel(%arg0: i32, %arg1: memref<16x128xbf16, #tpu.memory_space<vmem>>, %arg2: memref<128x512xbf16, #tpu.memory_space<vmem>>, %arg3: memref<16x512xf32, #tpu.memory_space<vmem>>, %arg4: memref<1x16x2xf32, #tpu.memory_space<vmem>>) attributes {dimension_semantics = [#tpu.dimension_semantics<parallel>], iteration_bounds = array<i64: 1>, scalar_prefetch = 0 : i64, scratch_operands = 0 : i64, tpu.core_type = #tpu.core_type<tc>, window_params = [{pipeline_mode = #tpu.pipeline_mode<synchronous>, transform_indices = @transform_0, window_bounds = array<i64: 16, 128>}, {transform_indices = @transform_1, window_bounds = array<i64: 128, 512>}, {transform_indices = @transform_2, window_bounds = array<i64: 16, 512>}, {transform_indices = @transform_3, window_bounds = array<i64: 1, 16, 2>}]} {
    %c0 = arith.constant 0 : index
    %c0_0 = arith.constant 0 : index
    %0 = vector.load %arg1[%c0, %c0_0] : memref<16x128xbf16, #tpu.memory_space<vmem>>, vector<16x128xbf16>
    %c0_1 = arith.constant 0 : index
    %c0_2 = arith.constant 0 : index
    %1 = vector.load %arg2[%c0_1, %c0_2] : memref<128x512xbf16, #tpu.memory_space<vmem>>, vector<128x512xbf16>
    %cst = arith.constant dense<0.000000e+00> : vector<16x512xf32>
    %2 = tpu.matmul %0, %1, %cst {dimension_numbers = #tpu.dot_dimension_numbers<[1], [0], [0], [1], [0, 0, 1, 1], [], []>} : vector<16x128xbf16>, vector<128x512xbf16>, vector<16x512xf32> -> vector<16x512xf32>
    %cst_3 = arith.constant dense<0.000000e+00> : vector<16xf32>
    %3 = vector.multi_reduction <add>, %2, %cst_3 [1] : vector<16x512xf32> to vector<16xf32>
    %4 = vector.shape_cast %3 : vector<16xf32> to vector<16x1xf32>
    %c0_4 = arith.constant 0 : index
    %c0_5 = arith.constant 0 : index
    %c0_6 = arith.constant 0 : index
    %5 = vector.load %arg4[%c0_4, %c0_5, %c0_6] : memref<1x16x2xf32, #tpu.memory_space<vmem>>, vector<1x16x1xf32>
    %6 = vector.shape_cast %5 : vector<1x16x1xf32> to vector<16x1xf32>
    %7 = vector.shape_cast %4 : vector<16x1xf32> to vector<1x16x1xf32>
    tpu.vector_store %arg4[%c0_4, %c0_5, %c0_6], %7 {strides = array<i32>} : memref<1x16x2xf32, #tpu.memory_space<vmem>>, vector<1x16x1xf32>,
    %8 = arith.mulf %2, %2 : vector<16x512xf32>
    %cst_7 = arith.constant dense<0.000000e+00> : vector<16xf32>
    %9 = vector.multi_reduction <add>, %8, %cst_7 [1] : vector<16x512xf32> to vector<16xf32>
    %10 = vector.shape_cast %9 : vector<16xf32> to vector<16x1xf32>
    %c0_8 = arith.constant 0 : index
    %c0_9 = arith.constant 0 : index
    %c1 = arith.constant 1 : index
    %11 = vector.load %arg4[%c0_8, %c0_9, %c1] : memref<1x16x2xf32, #tpu.memory_space<vmem>>, vector<1x16x1xf32>
    %12 = vector.shape_cast %11 : vector<1x16x1xf32> to vector<16x1xf32>
    %13 = vector.shape_cast %10 : vector<16x1xf32> to vector<1x16x1xf32>
    tpu.vector_store %arg4[%c0_8, %c0_9, %c1], %13 {strides = array<i32>} : memref<1x16x2xf32, #tpu.memory_space<vmem>>, vector<1x16x1xf32>,
    %c0_10 = arith.constant 0 : index
    %c0_11 = arith.constant 0 : index
    %14 = vector.load %arg3[%c0_10, %c0_11] : memref<16x512xf32, #tpu.memory_space<vmem>>, vector<16x512xf32>
    tpu.vector_store %arg3[%c0_10, %c0_11], %2 {strides = array<i32>} : memref<16x512xf32, #tpu.memory_space<vmem>>, vector<16x512xf32>,
    return
  }
  func.func @transform_0(%arg0: i32) -> (i32, i32) {
    %c0_i32 = arith.constant 0 : i32
    %c0_i32_0 = arith.constant 0 : i32
    %c0_i32_1 = arith.constant 0 : i32
    return %c0_i32, %c0_i32_0 : i32, i32
  }
  func.func @transform_1(%arg0: i32) -> (i32, i32) {
    %c0_i32 = arith.constant 0 : i32
    %c0_i32_0 = arith.constant 0 : i32
    return %c0_i32, %arg0 : i32, i32
  }
  func.func @transform_2(%arg0: i32) -> (i32, i32) {
    %c0_i32 = arith.constant 0 : i32
    %c0_i32_0 = arith.constant 0 : i32
    return %c0_i32, %arg0 : i32, i32
  }
  func.func @transform_3(%arg0: i32) -> (i32, i32, i32) {
    %c0_i32 = arith.constant 0 : i32
    %c0_i32_0 = arith.constant 0 : i32
    %c0_i32_1 = arith.constant 0 : i32
    return %arg0, %c0_i32, %c0_i32_0 : i32, i32, i32
  }
}

module attributes {stable_mosaic.version = 11 : i64} {
  func.func @kernel(%arg0: i32, %arg1: memref<32x256xbf16, #tpu.memory_space<vmem>>, %arg2: memref<256x128xbf16, #tpu.memory_space<vmem>>, %arg3: memref<32x128xf32, #tpu.memory_space<vmem>>, %arg4: memref<1x32x2xf32, #tpu.memory_space<vmem>>) attributes {dimension_semantics = [#tpu.dimension_semantics<parallel>], iteration_bounds = array<i64: 1>, scalar_prefetch = 0 : i64, scratch_operands = 0 : i64, tpu.core_type = #tpu.core_type<tc>, window_params = [{pipeline_mode = #tpu.pipeline_mode<synchronous>, transform_indices = @transform_0, window_bounds = array<i64: 32, 256>}, {transform_indices = @transform_1, window_bounds = array<i64: 256, 128>}, {transform_indices = @transform_2, window_bounds = array<i64: 32, 128>}, {transform_indices = @transform_3, window_bounds = array<i64: 1, 32, 2>}]} {
    %c0 = arith.constant 0 : index
    %c0_0 = arith.constant 0 : index
    %0 = vector.load %arg1[%c0, %c0_0] : memref<32x256xbf16, #tpu.memory_space<vmem>>, vector<32x256xbf16>
    %c0_1 = arith.constant 0 : index
    %c0_2 = arith.constant 0 : index
    %1 = vector.load %arg2[%c0_1, %c0_2] : memref<256x128xbf16, #tpu.memory_space<vmem>>, vector<256x128xbf16>
    %cst = arith.constant dense<0.000000e+00> : vector<32x128xf32>
    %2 = tpu.matmul %0, %1, %cst {dimension_numbers = #tpu.dot_dimension_numbers<[1], [0], [0], [1], [0, 0, 1, 1], [], []>} : vector<32x256xbf16>, vector<256x128xbf16>, vector<32x128xf32> -> vector<32x128xf32>
    %cst_3 = arith.constant dense<0.000000e+00> : vector<32xf32>
    %3 = vector.multi_reduction <add>, %2, %cst_3 [1] : vector<32x128xf32> to vector<32xf32>
    %4 = vector.shape_cast %3 : vector<32xf32> to vector<32x1xf32>
    %c0_4 = arith.constant 0 : index
    %c0_5 = arith.constant 0 : index
    %c0_6 = arith.constant 0 : index
    %5 = vector.load %arg4[%c0_4, %c0_5, %c0_6] : memref<1x32x2xf32, #tpu.memory_space<vmem>>, vector<1x32x1xf32>
    %6 = vector.shape_cast %5 : vector<1x32x1xf32> to vector<32x1xf32>
    %7 = vector.shape_cast %4 : vector<32x1xf32> to vector<1x32x1xf32>
    tpu.vector_store %arg4[%c0_4, %c0_5, %c0_6], %7 {strides = array<i32>} : memref<1x32x2xf32, #tpu.memory_space<vmem>>, vector<1x32x1xf32>,
    %8 = arith.mulf %2, %2 : vector<32x128xf32>
    %cst_7 = arith.constant dense<0.000000e+00> : vector<32xf32>
    %9 = vector.multi_reduction <add>, %8, %cst_7 [1] : vector<32x128xf32> to vector<32xf32>
    %10 = vector.shape_cast %9 : vector<32xf32> to vector<32x1xf32>
    %c0_8 = arith.constant 0 : index
    %c0_9 = arith.constant 0 : index
    %c1 = arith.constant 1 : index
    %11 = vector.load %arg4[%c0_8, %c0_9, %c1] : memref<1x32x2xf32, #tpu.memory_space<vmem>>, vector<1x32x1xf32>
    %12 = vector.shape_cast %11 : vector<1x32x1xf32> to vector<32x1xf32>
    %13 = vector.shape_cast %10 : vector<32x1xf32> to vector<1x32x1xf32>
    tpu.vector_store %arg4[%c0_8, %c0_9, %c1], %13 {strides = array<i32>} : memref<1x32x2xf32, #tpu.memory_space<vmem>>, vector<1x32x1xf32>,
    %c0_10 = arith.constant 0 : index
    %c0_11 = arith.constant 0 : index
    %14 = vector.load %arg3[%c0_10, %c0_11] : memref<32x128xf32, #tpu.memory_space<vmem>>, vector<32x128xf32>
    tpu.vector_store %arg3[%c0_10, %c0_11], %2 {strides = array<i32>} : memref<32x128xf32, #tpu.memory_space<vmem>>, vector<32x128xf32>,
    return
  }
  func.func @transform_0(%arg0: i32) -> (i32, i32) {
    %c0_i32 = arith.constant 0 : i32
    %c0_i32_0 = arith.constant 0 : i32
    %c0_i32_1 = arith.constant 0 : i32
    return %c0_i32, %c0_i32_0 : i32, i32
  }
  func.func @transform_1(%arg0: i32) -> (i32, i32) {
    %c0_i32 = arith.constant 0 : i32
    %c0_i32_0 = arith.constant 0 : i32
    return %c0_i32, %arg0 : i32, i32
  }
  func.func @transform_2(%arg0: i32) -> (i32, i32) {
    %c0_i32 = arith.constant 0 : i32
    %c0_i32_0 = arith.constant 0 : i32
    return %c0_i32, %arg0 : i32, i32
  }
  func.func @transform_3(%arg0: i32) -> (i32, i32, i32) {
    %c0_i32 = arith.constant 0 : i32
    %c0_i32_0 = arith.constant 0 : i32
    %c0_i32_1 = arith.constant 0 : i32
    return %arg0, %c0_i32, %c0_i32_0 : i32, i32, i32
  }
}

module attributes {stable_mosaic.version = 11 : i64} {
  func.func @kernel(%arg0: i32, %arg1: memref<64x512xbf16, #tpu.memory_space<vmem>>, %arg2: memref<512x32xbf16, #tpu.memory_space<vmem>>, %arg3: memref<64x32xf32, #tpu.memory_space<vmem>>, %arg4: memref<1x64x2xf32, #tpu.memory_space<vmem>>) attributes {dimension_semantics = [#tpu.dimension_semantics<parallel>], iteration_bounds = array<i64: 1>, scalar_prefetch = 0 : i64, scratch_operands = 0 : i64, tpu.core_type = #tpu.core_type<tc>, window_params = [{pipeline_mode = #tpu.pipeline_mode<synchronous>, transform_indices = @transform_0, window_bounds = array<i64: 64, 512>}, {transform_indices = @transform_1, window_bounds = array<i64: 512, 32>}, {transform_indices = @transform_2, window_bounds = array<i64: 64, 32>}, {transform_indices = @transform_3, window_bounds = array<i64: 1, 64, 2>}]} {
    %c0 = arith.constant 0 : index
    %c0_0 = arith.constant 0 : index
    %0 = vector.load %arg1[%c0, %c0_0] : memref<64x512xbf16, #tpu.memory_space<vmem>>, vector<64x512xbf16>
    %c0_1 = arith.constant 0 : index
    %c0_2 = arith.constant 0 : index
    %1 = vector.load %arg2[%c0_1, %c0_2] : memref<512x32xbf16, #tpu.memory_space<vmem>>, vector<512x32xbf16>
    %cst = arith.constant dense<0.000000e+00> : vector<64x32xf32>
    %2 = tpu.matmul %0, %1, %cst {dimension_numbers = #tpu.dot_dimension_numbers<[1], [0], [0], [1], [0, 0, 1, 1], [], []>} : vector<64x512xbf16>, vector<512x32xbf16>, vector<64x32xf32> -> vector<64x32xf32>
    %cst_3 = arith.constant dense<0.000000e+00> : vector<64xf32>
    %3 = vector.multi_reduction <add>, %2, %cst_3 [1] : vector<64x32xf32> to vector<64xf32>
    %4 = vector.shape_cast %3 : vector<64xf32> to vector<64x1xf32>
    %c0_4 = arith.constant 0 : index
    %c0_5 = arith.constant 0 : index
    %c0_6 = arith.constant 0 : index
    %5 = vector.load %arg4[%c0_4, %c0_5, %c0_6] : memref<1x64x2xf32, #tpu.memory_space<vmem>>, vector<1x64x1xf32>
    %6 = vector.shape_cast %5 : vector<1x64x1xf32> to vector<64x1xf32>
    %7 = vector.shape_cast %4 : vector<64x1xf32> to vector<1x64x1xf32>
    tpu.vector_store %arg4[%c0_4, %c0_5, %c0_6], %7 {strides = array<i32>} : memref<1x64x2xf32, #tpu.memory_space<vmem>>, vector<1x64x1xf32>,
    %8 = arith.mulf %2, %2 : vector<64x32xf32>
    %cst_7 = arith.constant dense<0.000000e+00> : vector<64xf32>
    %9 = vector.multi_reduction <add>, %8, %cst_7 [1] : vector<64x32xf32> to vector<64xf32>
    %10 = vector.shape_cast %9 : vector<64xf32> to vector<64x1xf32>
    %c0_8 = arith.constant 0 : index
    %c0_9 = arith.constant 0 : index
    %c1 = arith.constant 1 : index
    %11 = vector.load %arg4[%c0_8, %c0_9, %c1] : memref<1x64x2xf32, #tpu.memory_space<vmem>>, vector<1x64x1xf32>
    %12 = vector.shape_cast %11 : vector<1x64x1xf32> to vector<64x1xf32>
    %13 = vector.shape_cast %10 : vector<64x1xf32> to vector<1x64x1xf32>
    tpu.vector_store %arg4[%c0_8, %c0_9, %c1], %13 {strides = array<i32>} : memref<1x64x2xf32, #tpu.memory_space<vmem>>, vector<1x64x1xf32>,
    %c0_10 = arith.constant 0 : index
    %c0_11 = arith.constant 0 : index
    %14 = vector.load %arg3[%c0_10, %c0_11] : memref<64x32xf32, #tpu.memory_space<vmem>>, vector<64x32xf32>
    tpu.vector_store %arg3[%c0_10, %c0_11], %2 {strides = array<i32>} : memref<64x32xf32, #tpu.memory_space<vmem>>, vector<64x32xf32>,
    return
  }
  func.func @transform_0(%arg0: i32) -> (i32, i32) {
    %c0_i32 = arith.constant 0 : i32
    %c0_i32_0 = arith.constant 0 : i32
    %c0_i32_1 = arith.constant 0 : i32
    return %c0_i32, %c0_i32_0 : i32, i32
  }
  func.func @transform_1(%arg0: i32) -> (i32, i32) {
    %c0_i32 = arith.constant 0 : i32
    %c0_i32_0 = arith.constant 0 : i32
    return %c0_i32, %arg0 : i32, i32
  }
  func.func @transform_2(%arg0: i32) -> (i32, i32) {
    %c0_i32 = arith.constant 0 : i32
    %c0_i32_0 = arith.constant 0 : i32
    return %c0_i32, %arg0 : i32, i32
  }
  func.func @transform_3(%arg0: i32) -> (i32, i32, i32) {
    %c0_i32 = arith.constant 0 : i32
    %c0_i32_0 = arith.constant 0 : i32
    %c0_i32_1 = arith.constant 0 : i32
    return %arg0, %c0_i32, %c0_i32_0 : i32, i32, i32
  }
}

</mosaic_0001>

<bundles_post_ra>
// kernel: netd_forward.4
= control target key start
LH: loop header
LB: loop body
LE: loop exit
PB: predicated region body
PF: predicated region fallthrough
CT: control target
= control target key end

     0   :  { %s537_s9 = smov 0   ;;  %s539_s10 = smov 0   ;;  %s592_s0 = inlined_call_operand.vmem [shape: bf16[8,48], index: 0, kind: input, shape index: {}]   ;;  %s593_s1 = inlined_call_operand.vmem [shape: bf16[48,2048], index: 1, kind: input, shape index: {}]   ;;  %s594_s2 = inlined_call_operand.vmem [shape: f32[8,2048], index: 2, kind: output, shape index: {}]  }
   0x1   :  { %s541_s11 = smov 0  }
   0x2 LB: > { %s426_s12 = sadd.s32 4294967295, %s519_s11   ;;  %s554_s13 = sadd.s32 1, %s519_s11   ;;  %s519_s11 = sphi %s541_s11, %s597_s11   ;;  %s515_s10 = sphi %s539_s10, %s596_s10   ;;  %s511_s9 = sphi %s537_s9, %s595_s9  }
   0x3   : > { %s37_s14 = ssub.s32 %s519_s11, %s554_s13  ;;  %s40_s15 = sadd.s32 1, %s515_s10 }
   0x4   : > { %p38_p0 = scmp.eq.s32.totalorder %s37_s14, 0  ;;  %p47_p1 = scmp.ne.s32.totalorder %s515_s10, %s511_s9 }
   0x5   : > { %p48_p2 = scmp.eq.s32.totalorder %s519_s11, 0  ;;  %p429_p4 = scmp.ge.s32.totalorder %s519_s11, 4 }
   0x6   : > { %s563_s16 = scalar_select %p38_p0, %s515_s10, %s40_s15  }
   0x7   : > { %p49_p3 = por %p48_p2, %p47_p1  ;;  %102 = sbr.rel (%p429_p4) target bundleno = 24 (0x18), region = 20 }
   0xe   : > { %105 = sbr.rel (!%p49_p3) target bundleno = 24 (0x18), region = 24  ;;  %s107_s17 = sand.u32 (%p49_p3), 1, %s515_s10  }
   0xf   : > { %s451_s18 = sshll.u32 (%p49_p3), %s519_s11, 4  ;;  %s452_s19 = smul.u32 (%p49_p3), 96, %s107_s17 }
  0x10   : > { %s112_s22 = scalar_lea.vmem (%p49_p3), %s593_s1, %s451_s18 }
  0x11   : > { %v125_v0 = vld [vmem:[%s112_s22] sm:$0xff] (%p49_p3)  ;;  %v127_v1 = vld [vmem:[%s112_s22 + $0x8] sm:$0xff] (%p49_p3)  ;;  %s109_s23 = scalar_lea.vmem (%p49_p3), [#allocation2], %s452_s19 }
  0x12   : > { %v129_v2 = vld [vmem:[%s112_s22 + $0x40] sm:$0xff] (%p49_p3)  ;;  %v131_v3 = vld [vmem:[%s112_s22 + $0x48] sm:$0xff] (%p49_p3)  ;;  %126 = vst [vmem:[%s109_s23] sm:$0xff] (%p49_p3), %v125_v0  ;;  %128 = vst [vmem:[%s109_s23 + $0x8] sm:$0xff] (%p49_p3), %v127_v1 }
  0x13   : > { %v133_v4 = vld [vmem:[%s112_s22 + $0x80] sm:$0xff] (%p49_p3)  ;;  %v135_v5 = vld [vmem:[%s112_s22 + $0x88] sm:$0xff] (%p49_p3)  ;;  %130 = vst [vmem:[%s109_s23 + $0x10] sm:$0xff] (%p49_p3), %v129_v2  ;;  %132 = vst [vmem:[%s109_s23 + $0x18] sm:$0xff] (%p49_p3), %v131_v3 }
  0x14   : > { %134 = vst [vmem:[%s109_s23 + $0x20] sm:$0xff] (%p49_p3), %v133_v4  ;;  %136 = vst [vmem:[%s109_s23 + $0x28] sm:$0xff] (%p49_p3), %v135_v5  ;;  %v137_v6 = vld [vmem:[%s112_s22 + $0xc0] sm:$0xff] (%p49_p3)  ;;  %v139_v7 = vld [vmem:[%s112_s22 + $0xc8] sm:$0xff] (%p49_p3) }
  0x15   : > { %v141_v8 = vld [vmem:[%s112_s22 + $0x100] sm:$0xff]  ;;  %138 = vst [vmem:[%s109_s23 + $0x30] sm:$0xff] %v137_v6  ;;  %140 = vst [vmem:[%s109_s23 + $0x38] sm:$0xff] %v139_v7  ;;  %v143_v9 = vld [vmem:[%s112_s22 + $0x108] sm:$0xff] }
  0x16   : > { %142 = vst [vmem:[%s109_s23 + $0x40] sm:$0xff] %v141_v8  ;;  %v145_v10 = vld [vmem:[%s112_s22 + $0x140] sm:$0xff]  ;;  %v147_v11 = vld [vmem:[%s112_s22 + $0x148] sm:$0xff]  ;;  %144 = vst [vmem:[%s109_s23 + $0x48] sm:$0xff] %v143_v9 }
  0x17   : > { %146 = vst [vmem:[%s109_s23 + $0x50] sm:$0xff] %v145_v10  ;;  %148 = vst [vmem:[%s109_s23 + $0x58] sm:$0xff] %v147_v11 }
  0x18 PF: > { %p432_p5 = scmp.ge.s32.totalorder %s519_s11, 1  ;;  %p153_p6 = scmp.lt.s32.totalorder %s519_s11, 5 }
  0x1a   : > { %p154_p7 = pnand %p432_p5, %p153_p6 }
  0x1b   : > { %s160_s24 = sand.u32 (!%p154_p7), 1, %s511_s9   ;;  %v521_v12 = vmov (!%p154_p7), 0   ;;  %v189_v25 = vld [vmem:[%s592_s0] sm:$0xf] (!%p154_p7)  ;;  %vm262_vm0 = vcmask (!%p154_p7), 392192   ;;  %s433_s29 = sshll.u32 (!%p154_p7), %s426_s12, 2 }
  0x1c   : > { %157 = sbr.rel (%p154_p7) target bundleno = 264 (0x108), region = 47  ;;  %298 = vmatprep.mubr.bf16.mxu0 (!%p154_p7), %v521_v12  ;;  %339 = vmatprep.mubr.bf16.mxu1 (!%p154_p7), %v521_v12  ;;  %p183_p8 = scmp.lt.s32.totalorder (!%p154_p7), %s433_s29, 15 }
  0x1d   : > { %s453_s25 = smul.u32 (!%p154_p7), 96, %s160_s24 }
  0x1f   : > { %s162_s26 = scalar_lea.vmem (!%p154_p7), [#allocation2], %s453_s25 }
  0x20   : > { %v479_v13 = vld [vmem:[%s162_s26 + $0x4] ss:$16 sps:$4 sm:$0xff] (!%p154_p7)   ;;  %v481_v14 = vld [vmem:[%s162_s26 + $0xc] ss:$16 sps:$4 sm:$0xff] (!%p154_p7)   ;;  %v483_v15 = vld [vmem:[%s162_s26] ss:$16 sps:$4 sm:$0xff] (!%p154_p7)  }
  0x21   : > { %266 = vmatprep.subr.bf16.mxu0 (!%p154_p7), %v479_v13  ;;  %v484_v16 = vld [vmem:[%s162_s26 + $0x8] ss:$16 sps:$4 sm:$0xff] (!%p154_p7)   ;;  %307 = vmatprep.subr.bf16.mxu1 (!%p154_p7), %v481_v14  ;;  %v485_v17 = vld [vmem:[%s162_s26 + $0x24] ss:$16 sps:$4 sm:$0xff] (!%p154_p7)   ;;  %v487_v18 = vld [vmem:[%s162_s26 + $0x2c] ss:$16 sps:$4 sm:$0xff] (!%p154_p7)  }
  0x22   : > { %267 = vmatpush1.bf16.msra.mxu0 (!%p154_p7), %v483_v15  ;;  %308 = vmatpush1.bf16.msra.mxu1 (!%p154_p7), %v484_v16  ;;  %v489_v19 = vld [vmem:[%s162_s26 + $0x20] ss:$16 sps:$4 sm:$0xff] (!%p154_p7)   ;;  %v490_v20 = vld [vmem:[%s162_s26 + $0x28] ss:$16 sps:$4 sm:$0xff] (!%p154_p7)   ;;  %v491_v21 = vld [vmem:[%s162_s26 + $0x44] ss:$16 sps:$4 sm:$0xff] (!%p154_p7)  }
  0x23   : > { %268 = vmatprep.subr.bf16.mxu0 %v485_v17  ;;  %309 = vmatprep.subr.bf16.mxu1 %v487_v18  ;;  %v493_v22 = vld [vmem:[%s162_s26 + $0x4c] ss:$16 sps:$4 sm:$0xff]   ;;  %v495_v23 = vld [vmem:[%s162_s26 + $0x40] ss:$16 sps:$4 sm:$0xff]   ;;  %v496_v24 = vld [vmem:[%s162_s26 + $0x48] ss:$16 sps:$4 sm:$0xff]  }
  0x24   : > { %s599_s29 = smov (!%p183_p8, %s433_s29), 15 }
  0x25   : > { %s434_s30 = sshll.u32 %s599_s29, 3 }
  0x26   : > { %269 = vmatpush1.bf16.msra.mxu0 %v489_v19  ;;  %310 = vmatpush1.bf16.msra.mxu1 %v490_v20  ;;  %s186_s5 = scalar_lea.vmem %s594_s2, %s434_s30 }
  0x27   : > { %270 = vmatprep.subr.bf16.mxu0 %v491_v21  ;;  %311 = vmatprep.subr.bf16.mxu1 %v493_v22 }
  0x2a   : > { %271 = vmatpush1.bf16.msra.mxu0 %v495_v23  ;;  %312 = vmatpush1.bf16.msra.mxu1 %v496_v24 }
  0x2d   : > { %447 = vmatmul.mubr.msk.bf16.vlgmr.msra.gmra.mrb[0].mxu0 %vm262_vm0, %v189_v25  ;;  %448 = vmatmul.mubr.msk.bf16.vlgmr.msra.gmra.mrb[0].mxu1 %vm262_vm0, %v189_v25 }
 0x100   : > { %v300_v26 = vpop.f32.mrb[0].mxu0  ;;  %v341_v27 = vpop.f32.mrb[0].mxu1 }
 0x101   : > { %vm348_vm1 = vcmp.ge.f32.partialorder %v300_v26, 0.0  ;;  %v352_v28 = vmul.f32 0.2, %v300_v26  ;;  %vm350_vm2 = vcmp.ge.f32.partialorder %v341_v27, 0.0  ;;  %v354_v29 = vmul.f32 0.2, %v341_v27 }
 0x102   : > { %v302_v30 = vpop.f32.mrb[1].mxu0  ;;  %v343_v31 = vpop.f32.mrb[1].mxu1 }
 0x103   : > { %v356_v32 = vsel %vm348_vm1, %v300_v26, %v352_v28  ;;  %v358_v33 = vsel %vm350_vm2, %v341_v27, %v354_v29  ;;  %vm349_vm3 = vcmp.ge.f32.partialorder %v302_v30, 0.0  ;;  %v353_v34 = vmul.f32 0.2, %v302_v30  ;;  %v304_v35 = vpop.f32.mrb[2].mxu0  ;;  %v345_v36 = vpop.f32.mrb[2].mxu1 }
 0x104   : > { %360 = vst [vmem:[%s186_s5] sm:$0xff] %v356_v32  ;;  %362 = vst [vmem:[%s186_s5 + $0x10] sm:$0xff] %v358_v33  ;;  %vm351_vm4 = vcmp.ge.f32.partialorder %v343_v31, 0.0  ;;  %v355_v37 = vmul.f32 0.2, %v343_v31  ;;  %v305_v38 = vpop.f32.mrb[3].mxu0  ;;  %v346_v39 = vpop.f32.mrb[3].mxu1 }
 0x105   : > { %v357_v40 = vsel %vm349_vm3, %v302_v30, %v353_v34 }
 0x106   : > { %361 = vst [vmem:[%s186_s5 + $0x8] sm:$0xff] %v357_v40  ;;  %v359_v41 = vsel %vm351_vm4, %v343_v31, %v355_v37 }
 0x107   : > { %363 = vst [vmem:[%s186_s5 + $0x18] sm:$0xff] %v359_v41 }
 0x108 PF: > { %p9_p9 = scmp.ge.s32.totalorder %s554_s13, 6   ;;  %s595_s9 = smov %s515_s10 }
 0x109   : > { %s596_s10 = smov %s563_s16  ;;  %s597_s11 = smov %s554_s13 }
 0x10a   :  { %11 = sbr.rel (!%p9_p9) target bundleno = 2 (0x2), region = 86 }

// kernel: netd_forward.5
= control target key start
LH: loop header
LB: loop body
LE: loop exit
PB: predicated region body
PF: predicated region fallthrough
CT: control target
= control target key end

     0   :  { %v433_v1 = vmov 0   ;;  %vm310_vm0 = vcmask 7168   ;;  %vm331_vm1 = vcmask 15368   ;;  %s589_s1 = inlined_call_operand.vmem [shape: bf16[128,512], index: 1, kind: input, shape index: {}]   ;;  %s590_s0 = inlined_call_operand.vmem [shape: bf16[16,128], index: 0, kind: input, shape index: {}]   ;;  %s591_s2 = inlined_call_operand.vmem [shape: f32[16,512], index: 2, kind: output, shape index: {0}]   ;;  %s592_s3 = inlined_call_operand.vmem [shape: f32[1,16,2], index: 3, kind: output, shape index: {1}]  }
   0x1   :  { %v384_v0 = vld [vmem:[%s589_s1 + $0x4] ss:$16 sps:$4 sm:$0xff]   ;;  %246 = vmatprep.mubr.bf16.mxu0 %v433_v1  ;;  %289 = vmatprep.mubr.bf16.mxu1 %v433_v1  ;;  %v386_v2 = vld [vmem:[%s589_s1 + $0xc] ss:$16 sps:$4 sm:$0xff]   ;;  %v388_v3 = vld [vmem:[%s589_s1] ss:$16 sps:$4 sm:$0xff]  }
   0x2   :  { %214 = vmatprep.subr.bf16.mxu0 %v384_v0  ;;  %v389_v4 = vld [vmem:[%s589_s1 + $0x8] ss:$16 sps:$4 sm:$0xff]   ;;  %257 = vmatprep.subr.bf16.mxu1 %v386_v2  ;;  %v390_v5 = vld [vmem:[%s589_s1 + $0x24] ss:$16 sps:$4 sm:$0xff]   ;;  %v392_v6 = vld [vmem:[%s589_s1 + $0x2c] ss:$16 sps:$4 sm:$0xff]  }
   0x3   :  { %215 = vmatpush1.bf16.msra.mxu0 %v388_v3  ;;  %258 = vmatpush1.bf16.msra.mxu1 %v389_v4  ;;  %v394_v7 = vld [vmem:[%s589_s1 + $0x20] ss:$16 sps:$4 sm:$0xff]   ;;  %v395_v8 = vld [vmem:[%s589_s1 + $0x28] ss:$16 sps:$4 sm:$0xff]   ;;  %v396_v9 = vld [vmem:[%s589_s1 + $0x44] ss:$16 sps:$4 sm:$0xff]  }
   0x4   :  { %216 = vmatprep.subr.bf16.mxu0 %v390_v5  ;;  %259 = vmatprep.subr.bf16.mxu1 %v392_v6  ;;  %v398_v10 = vld [vmem:[%s589_s1 + $0x4c] ss:$16 sps:$4 sm:$0xff]   ;;  %v400_v11 = vld [vmem:[%s589_s1 + $0x40] ss:$16 sps:$4 sm:$0xff]   ;;  %v401_v12 = vld [vmem:[%s589_s1 + $0x48] ss:$16 sps:$4 sm:$0xff]  }
   0x5   :  { %v402_v13 = vld [vmem:[%s589_s1 + $0x64] ss:$16 sps:$4 sm:$0xff]   ;;  %v404_v14 = vld [vmem:[%s589_s1 + $0x6c] ss:$16 sps:$4 sm:$0xff]   ;;  %v406_v15 = vld [vmem:[%s589_s1 + $0x60] ss:$16 sps:$4 sm:$0xff]  }
   0x6   :  { %v407_v16 = vld [vmem:[%s589_s1 + $0x68] ss:$16 sps:$4 sm:$0xff]   ;;  %v408_v17 = vld [vmem:[%s589_s1 + $0x84] ss:$16 sps:$4 sm:$0xff]   ;;  %v410_v18 = vld [vmem:[%s589_s1 + $0x8c] ss:$16 sps:$4 sm:$0xff]  }
   0x7   :  { %217 = vmatpush1.bf16.msra.mxu0 %v394_v7  ;;  %260 = vmatpush1.bf16.msra.mxu1 %v395_v8  ;;  %v412_v19 = vld [vmem:[%s589_s1 + $0x80] ss:$16 sps:$4 sm:$0xff]   ;;  %v413_v20 = vld [vmem:[%s589_s1 + $0x88] ss:$16 sps:$4 sm:$0xff]   ;;  %v414_v21 = vld [vmem:[%s589_s1 + $0xa4] ss:$16 sps:$4 sm:$0xff]  }
   0x8   :  { %218 = vmatprep.subr.bf16.mxu0 %v396_v9  ;;  %261 = vmatprep.subr.bf16.mxu1 %v398_v10  ;;  %v416_v22 = vld [vmem:[%s589_s1 + $0xac] ss:$16 sps:$4 sm:$0xff]   ;;  %v418_v23 = vld [vmem:[%s589_s1 + $0xa0] ss:$16 sps:$4 sm:$0xff]   ;;  %v419_v24 = vld [vmem:[%s589_s1 + $0xa8] ss:$16 sps:$4 sm:$0xff]  }
   0x9   :  { %v420_v25 = vld [vmem:[%s589_s1 + $0xc4] ss:$16 sps:$4 sm:$0xff]   ;;  %v422_v26 = vld [vmem:[%s589_s1 + $0xcc] ss:$16 sps:$4 sm:$0xff]   ;;  %v424_v27 = vld [vmem:[%s589_s1 + $0xc0] ss:$16 sps:$4 sm:$0xff]  }
   0xa   :  { %v425_v28 = vld [vmem:[%s589_s1 + $0xc8] ss:$16 sps:$4 sm:$0xff]   ;;  %v426_v29 = vld [vmem:[%s589_s1 + $0xe4] ss:$16 sps:$4 sm:$0xff]   ;;  %v428_v30 = vld [vmem:[%s589_s1 + $0xec] ss:$16 sps:$4 sm:$0xff]  }
   0xb   :  { %219 = vmatpush1.bf16.msra.mxu0 %v400_v11  ;;  %262 = vmatpush1.bf16.msra.mxu1 %v401_v12  ;;  %v430_v31 = vld [vmem:[%s589_s1 + $0xe0] ss:$16 sps:$4 sm:$0xff]   ;;  %v431_v32 = vld [vmem:[%s589_s1 + $0xe8] ss:$16 sps:$4 sm:$0xff]  }
   0xc   :  { %220 = vmatprep.subr.bf16.mxu0 %v402_v13  ;;  %263 = vmatprep.subr.bf16.mxu1 %v404_v14  ;;  %v432_v33 = vld [vmem:[%s590_s0] sm:$0xff]  }
   0xf   :  { %221 = vmatpush1.bf16.msra.mxu0 %v406_v15  ;;  %264 = vmatpush1.bf16.msra.mxu1 %v407_v16 }
  0x10   :  { %222 = vmatprep.subr.bf16.mxu0 %v408_v17  ;;  %265 = vmatprep.subr.bf16.mxu1 %v410_v18 }
  0x13   :  { %223 = vmatpush1.bf16.msra.mxu0 %v412_v19  ;;  %266 = vmatpush1.bf16.msra.mxu1 %v413_v20 }
  0x14   :  { %224 = vmatprep.subr.bf16.mxu0 %v414_v21  ;;  %267 = vmatprep.subr.bf16.mxu1 %v416_v22 }
  0x17   :  { %225 = vmatpush1.bf16.msra.mxu0 %v418_v23  ;;  %268 = vmatpush1.bf16.msra.mxu1 %v419_v24 }
  0x18   :  { %226 = vmatprep.subr.bf16.mxu0 %v420_v25  ;;  %269 = vmatprep.subr.bf16.mxu1 %v422_v26 }
  0x1b   :  { %227 = vmatpush1.bf16.msra.mxu0 %v424_v27  ;;  %270 = vmatpush1.bf16.msra.mxu1 %v425_v28 }
  0x1c   :  { %228 = vmatprep.subr.bf16.mxu0 %v426_v29  ;;  %271 = vmatprep.subr.bf16.mxu1 %v428_v30 }
  0x1f   :  { %229 = vmatpush1.bf16.msra.mxu0 %v430_v31  ;;  %272 = vmatpush1.bf16.msra.mxu1 %v431_v32 }
  0x22   :  { %247 = vmatmul.mubr.bf16.vlgmr.msra.gmra.mrb[0].mxu0 %v432_v33  ;;  %290 = vmatmul.mubr.bf16.vlgmr.msra.gmra.mrb[0].mxu1 %v432_v33 }
  0xf5   :  { %v248_v34 = vpop.f32.mrb[0].mxu0  ;;  %v291_v35 = vpop.f32.mrb[0].mxu1 }
  0xf6   :  { %v313_v36 = vmul.f32 %v248_v34, %v248_v34  ;;  %334 = vst [vmem:[%s591_s2] sm:$0xff] %v248_v34  ;;  %336 = vst [vmem:[%s591_s2 + $0x10] sm:$0xff] %v291_v35  ;;  %v250_v37 = vpop.f32.mrb[1].mxu0  ;;  %v293_v38 = vpop.f32.mrb[1].mxu1  ;;  %v315_v43 = vmul.f32 %v291_v35, %v291_v35 }
  0xf7   :  { %v300_v39 = vadd.f32 %v250_v37, %v248_v34  ;;  %v314_v40 = vmul.f32 %v250_v37, %v250_v37  ;;  %335 = vst [vmem:[%s591_s2 + $0x8] sm:$0xff] %v250_v37  ;;  %337 = vst [vmem:[%s591_s2 + $0x18] sm:$0xff] %v293_v38  ;;  %v252_v41 = vpop.f32.mrb[2].mxu0  ;;  %v295_v42 = vpop.f32.mrb[2].mxu1  ;;  %v316_v55 = vmul.f32 %v293_v38, %v293_v38 }
  0xf8   :  { %v317_v44 = vmul.f32 %v252_v41, %v252_v41  ;;  %338 = vst [vmem:[%s591_s2 + $0x20] sm:$0xff] %v252_v41  ;;  %340 = vst [vmem:[%s591_s2 + $0x30] sm:$0xff] %v295_v42  ;;  %v254_v45 = vpop.f32.mrb[3].mxu0  ;;  %v297_v46 = vpop.f32.mrb[3].mxu1  ;;  %v319_v51 = vmul.f32 %v295_v42, %v295_v42 }
  0xf9   :  { %v305_v47 = vadd.f32 %v254_v45, %v252_v41  ;;  %v318_v48 = vmul.f32 %v254_v45, %v254_v45  ;;  %339 = vst [vmem:[%s591_s2 + $0x28] sm:$0xff] %v254_v45  ;;  %341 = vst [vmem:[%s591_s2 + $0x38] sm:$0xff] %v297_v46  ;;  %v301_v49 = vadd.f32 %v300_v39, %v291_v35 }
  0xfa   :  { %v321_v50 = vadd.f32 %v314_v40, %v313_v36  ;;  %v320_v57 = vmul.f32 %v297_v46, %v297_v46 }
  0xfb   :  { %v326_v52 = vadd.f32 %v318_v48, %v317_v44  ;;  %v302_v53 = vadd.f32 %v301_v49, %v293_v38  ;;  %v306_v54 = vadd.f32 %v305_v47, %v295_v42 }
  0xfc   :  { %v322_v56 = vadd.f32 %v321_v50, %v315_v43 }
  0xfd   :  { %303 = vadd.xlane.f32.xlu0 %v302_v53  ;;  %v307_v58 = vadd.f32 %v306_v54, %v297_v46  ;;  %v327_v59 = vadd.f32 %v326_v52, %v319_v51 }
  0xfe   :  { %v323_v60 = vadd.f32 %v322_v56, %v316_v55 }
  0xff   :  { %v328_v61 = vadd.f32 %v327_v59, %v320_v57 }
 0x100   :  { %324 = vadd.xlane.f32.xlu1 %v323_v60 }
 0x101   :  { %308 = vadd.xlane.f32.xlu0 %v307_v58 }
 0x104   :  { %329 = vadd.xlane.f32.xlu1 %v328_v61 }
 0x18a   :  { %v304_v62 = vpop.xlane.xlu0 %303 }
 0x18b   :  { %311 = vst.msk [vmem:[%s592_s3] sm:$0xff] %vm310_vm0, %v304_v62 }
 0x18d   :  { %v325_v63 = vpop.xlane.xlu1 %324 }
 0x18e   :  { %332 = vst.msk [vmem:[%s592_s3] sm:$0xff] %vm331_vm1, %v325_v63  ;;  %v309_v0 = vpop.xlane.xlu0 %308 }
 0x18f   :  { %312 = vst.msk [vmem:[%s592_s3 + $0x8] sm:$0xff] %vm310_vm0, %v309_v0 }
 0x191   :  { %v330_v1 = vpop.xlane.xlu1 %329 }
 0x192   :  { %333 = vst.msk [vmem:[%s592_s3 + $0x8] sm:$0xff] %vm331_vm1, %v330_v1 }

// kernel: netd_forward.6
= control target key start
LH: loop header
LB: loop body
LE: loop exit
PB: predicated region body
PF: predicated region fallthrough
CT: control target
= control target key end

     0   :  { %vm223_vm0 = vcmask 7168   ;;  %vm240_vm1 = vcmask 15368   ;;  %s459_s1 = inlined_call_operand.vmem [shape: bf16[256,128], index: 1, kind: input, shape index: {}]   ;;  %s460_s0 = inlined_call_operand.vmem [shape: bf16[32,256], index: 0, kind: input, shape index: {}]   ;;  %s461_s2 = inlined_call_operand.vmem [shape: f32[32,128], index: 2, kind: output, shape index: {0}]   ;;  %s462_s3 = inlined_call_operand.vmem [shape: f32[1,32,2], index: 3, kind: output, shape index: {1}]  }
   0x1   :  { %v321_v0 = vld [vmem:[%s459_s1 + $0x40] sm:$0xff]   ;;  %v323_v2 = vld [vmem:[%s459_s1 + $0x48] sm:$0xff]   ;;  %v325_v4 = vld [vmem:[%s459_s1 + $0x50] sm:$0xff]  }
   0x2   :  { %v322_v1 = vld [vmem:[%s459_s1] sm:$0xff]   ;;  %277 = vmatprep.subr.bf16.mxu0 %v321_v0  ;;  %305 = vmatprep.subr.bf16.mxu1 %v321_v0  ;;  %v324_v3 = vld [vmem:[%s459_s1 + $0x8] sm:$0xff]   ;;  %v326_v5 = vld [vmem:[%s459_s1 + $0x10] sm:$0xff]  }
   0x3   :  { %278 = vmatpush3.bf16.msra.mxu0 %v322_v1  ;;  %313 = vmatpush3.bf16.msra.mxu1 %v322_v1  ;;  %v327_v6 = vld [vmem:[%s459_s1 + $0x58] sm:$0xff]   ;;  %v329_v8 = vld [vmem:[%s459_s1 + $0x60] sm:$0xff]   ;;  %v331_v10 = vld [vmem:[%s459_s1 + $0x68] sm:$0xff]  }
   0x4   :  { %279 = vmatprep.subr.bf16.mxu0 %v323_v2  ;;  %306 = vmatprep.subr.bf16.mxu1 %v323_v2  ;;  %v328_v7 = vld [vmem:[%s459_s1 + $0x18] sm:$0xff]   ;;  %v330_v9 = vld [vmem:[%s459_s1 + $0x20] sm:$0xff]   ;;  %v332_v13 = vld [vmem:[%s459_s1 + $0x28] sm:$0xff]  }
   0x5   :  { %v339_v11 = vld [vmem:[%s460_s0 + $0x4] ss:$8 sps:$4 sm:$0xff]   ;;  %v342_v12 = vld [vmem:[%s460_s0 + $0x14] ss:$8 sps:$4 sm:$0xff]   ;;  %v337_v18 = vld [vmem:[%s460_s0] ss:$8 sps:$4 sm:$0xff]  }
   0x6   :  { %v333_v14 = vld [vmem:[%s459_s1 + $0x70] sm:$0xff]   ;;  %198 = vmatprep.mubr.bf16.mxu0 %v339_v11  ;;  %206 = vmatprep.mubr.bf16.mxu1 %v342_v12  ;;  %v335_v16 = vld [vmem:[%s459_s1 + $0x78] sm:$0xff]  }
   0x7   :  { %280 = vmatpush3.bf16.msra.mxu0 %v324_v3  ;;  %314 = vmatpush3.bf16.msra.mxu1 %v324_v3  ;;  %v334_v15 = vld [vmem:[%s459_s1 + $0x30] sm:$0xff]   ;;  %v336_v17 = vld [vmem:[%s459_s1 + $0x38] sm:$0xff]  }
   0x8   :  { %281 = vmatprep.subr.bf16.mxu0 %v325_v4  ;;  %307 = vmatprep.subr.bf16.mxu1 %v325_v4  ;;  %v340_v19 = vld [vmem:[%s460_s0 + $0x10] ss:$8 sps:$4 sm:$0xff]  }
   0xb   :  { %282 = vmatpush3.bf16.msra.mxu0 %v326_v5  ;;  %315 = vmatpush3.bf16.msra.mxu1 %v326_v5 }
   0xc   :  { %283 = vmatprep.subr.bf16.mxu0 %v327_v6  ;;  %308 = vmatprep.subr.bf16.mxu1 %v327_v6 }
   0xf   :  { %284 = vmatpush3.bf16.msra.mxu0 %v328_v7  ;;  %316 = vmatpush3.bf16.msra.mxu1 %v328_v7 }
  0x10   :  { %285 = vmatprep.subr.bf16.mxu0 %v329_v8  ;;  %309 = vmatprep.subr.bf16.mxu1 %v329_v8 }
  0x13   :  { %286 = vmatpush3.bf16.msra.mxu0 %v330_v9  ;;  %317 = vmatpush3.bf16.msra.mxu1 %v330_v9 }
  0x14   :  { %287 = vmatprep.subr.bf16.mxu0 %v331_v10  ;;  %310 = vmatprep.subr.bf16.mxu1 %v331_v10 }
  0x17   :  { %288 = vmatpush3.bf16.msra.mxu0 %v332_v13  ;;  %318 = vmatpush3.bf16.msra.mxu1 %v332_v13 }
  0x18   :  { %289 = vmatprep.subr.bf16.mxu0 %v333_v14  ;;  %311 = vmatprep.subr.bf16.mxu1 %v333_v14 }
  0x1b   :  { %290 = vmatpush3.bf16.msra.mxu0 %v334_v15  ;;  %319 = vmatpush3.bf16.msra.mxu1 %v334_v15 }
  0x1c   :  { %291 = vmatprep.subr.bf16.mxu0 %v335_v16  ;;  %312 = vmatprep.subr.bf16.mxu1 %v335_v16 }
  0x1f   :  { %292 = vmatpush3.bf16.msra.mxu0 %v336_v17  ;;  %320 = vmatpush3.bf16.msra.mxu1 %v336_v17 }
  0x22   :  { %199 = vmatmul.mubr.bf16.vlgmr.msra.gmra.mrb[0].mxu0 %v337_v18  ;;  %207 = vmatmul.mubr.bf16.vlgmr.msra.gmra.mrb[0].mxu1 %v340_v19 }
  0xf5   :  { %v293_v20 = vpop.f32.mrb[0].mxu0  ;;  %v299_v21 = vpop.f32.mrb[0].mxu1 }
  0xf6   :  { %v294_v22 = vpop.f32.mrb[1].mxu0  ;;  %v300_v23 = vpop.f32.mrb[1].mxu1 }
  0xf7   :  { %v295_v24 = vadd.f32 %v294_v22, %v293_v20  ;;  %v301_v25 = vadd.f32 %v300_v23, %v299_v21  ;;  %v296_v26 = vpop.f32.mrb[2].mxu0  ;;  %v302_v27 = vpop.f32.mrb[2].mxu1 }
  0xf8   :  { %v297_v28 = vpop.f32.mrb[3].mxu0  ;;  %v303_v29 = vpop.f32.mrb[3].mxu1 }
  0xf9   :  { %245 = vst [vmem:[%s461_s2] sm:$0xff] %v295_v24  ;;  %247 = vst [vmem:[%s461_s2 + $0x10] sm:$0xff] %v301_v25  ;;  %v298_v30 = vadd.f32 %v297_v28, %v296_v26  ;;  %v304_v31 = vadd.f32 %v303_v29, %v302_v27  ;;  %219 = vadd.xlane.f32.xlu1 %v301_v25  ;;  %215 = vadd.xlane.f32.xlu0 %v295_v24 }
  0xfa   :  { %v228_v33 = vmul.f32 %v295_v24, %v295_v24  ;;  %v230_v35 = vmul.f32 %v301_v25, %v301_v25 }
  0xfb   :  { %246 = vst [vmem:[%s461_s2 + $0x8] sm:$0xff] %v298_v30  ;;  %248 = vst [vmem:[%s461_s2 + $0x18] sm:$0xff] %v304_v31  ;;  %v229_v32 = vmul.f32 %v298_v30, %v298_v30  ;;  %v231_v34 = vmul.f32 %v304_v31, %v304_v31 }
  0xfd   :  { %221 = vadd.xlane.f32.xlu1 %v304_v31  ;;  %217 = vadd.xlane.f32.xlu0 %v298_v30 }
 0x101   :  { %234 = vadd.xlane.f32.xlu1 %v229_v32  ;;  %232 = vadd.xlane.f32.xlu0 %v228_v33 }
 0x105   :  { %238 = vadd.xlane.f32.xlu1 %v231_v34  ;;  %236 = vadd.xlane.f32.xlu0 %v230_v35 }
 0x186   :  { %v220_v36 = vpop.xlane.xlu1 %219  ;;  %v216_v37 = vpop.xlane.xlu0 %215 }
 0x187   :  { %226 = vst.msk [vmem:[%s462_s3 + $0x10] sm:$0xff] %vm223_vm0, %v220_v36  ;;  %224 = vst.msk [vmem:[%s462_s3] sm:$0xff] %vm223_vm0, %v216_v37 }
 0x18a   :  { %v222_v38 = vpop.xlane.xlu1 %221  ;;  %v218_v39 = vpop.xlane.xlu0 %217 }
 0x18b   :  { %227 = vst.msk [vmem:[%s462_s3 + $0x18] sm:$0xff] %vm223_vm0, %v222_v38  ;;  %225 = vst.msk [vmem:[%s462_s3 + $0x8] sm:$0xff] %vm223_vm0, %v218_v39 }
 0x18e   :  { %v235_v40 = vpop.xlane.xlu1 %234  ;;  %v233_v41 = vpop.xlane.xlu0 %232 }
 0x18f   :  { %242 = vst.msk [vmem:[%s462_s3 + $0x8] sm:$0xff] %vm240_vm1, %v235_v40  ;;  %241 = vst.msk [vmem:[%s462_s3] sm:$0xff] %vm240_vm1, %v233_v41 }
 0x192   :  { %v239_v42 = vpop.xlane.xlu1 %238  ;;  %v237_v43 = vpop.xlane.xlu0 %236 }
 0x193   :  { %244 = vst.msk [vmem:[%s462_s3 + $0x18] sm:$0xff] %vm240_vm1, %v239_v42  ;;  %243 = vst.msk [vmem:[%s462_s3 + $0x10] sm:$0xff] %vm240_vm1, %v237_v43 }

// kernel: netd_forward.7
= control target key start
LH: loop header
LB: loop body
LE: loop exit
PB: predicated region body
PF: predicated region fallthrough
CT: control target
= control target key end

     0   :  { %vm496_vm0 = vcmask 261120   ;;  %vm521_vm1 = vcmask 7168   ;;  %vm562_vm2 = vcmask 15368   ;;  %s1047_s1 = inlined_call_operand.vmem [shape: bf16[512,32], index: 1, kind: input, shape index: {}]   ;;  %s1048_s0 = inlined_call_operand.vmem [shape: bf16[64,512], index: 0, kind: input, shape index: {}]   ;;  %s1049_s2 = inlined_call_operand.vmem [shape: f32[64,32], index: 2, kind: output, shape index: {0}]   ;;  %s1050_s3 = inlined_call_operand.vmem [shape: f32[1,64,2], index: 3, kind: output, shape index: {1}]  }
   0x1   :  { %v715_v0 = vld [vmem:[%s1047_s1 + $0x40] sm:$0xff]   ;;  %v719_v4 = vld [vmem:[%s1047_s1 + $0x48] sm:$0xff]   ;;  %v723_v8 = vld [vmem:[%s1047_s1 + $0x50] sm:$0xff]  }
   0x2   :  { %v716_v1 = vld [vmem:[%s1047_s1 + $0xc0] sm:$0xff]   ;;  %635 = vmatprep.subr.bf16.mxu0 %v715_v0  ;;  %v720_v5 = vld [vmem:[%s1047_s1 + $0xc8] sm:$0xff]   ;;  %v724_v9 = vld [vmem:[%s1047_s1 + $0xd0] sm:$0xff]  }
   0x3   :  { %v717_v2 = vld [vmem:[%s1047_s1] sm:$0xff]   ;;  %675 = vmatprep.subr.bf16.mxu1 %v716_v1  ;;  %v721_v6 = vld [vmem:[%s1047_s1 + $0x8] sm:$0xff]   ;;  %v725_v10 = vld [vmem:[%s1047_s1 + $0x10] sm:$0xff]  }
   0x4   :  { %v718_v3 = vld [vmem:[%s1047_s1 + $0x80] sm:$0xff]   ;;  %636 = vmatpush3.bf16.msra.mxu0 %v717_v2  ;;  %v722_v7 = vld [vmem:[%s1047_s1 + $0x88] sm:$0xff]   ;;  %v726_v11 = vld [vmem:[%s1047_s1 + $0x90] sm:$0xff]  }
   0x5   :  { %676 = vmatpush3.bf16.msra.mxu1 %v718_v3  ;;  %637 = vmatprep.subr.bf16.mxu0 %v719_v4  ;;  %v727_v12 = vld [vmem:[%s1047_s1 + $0x58] sm:$0xff]   ;;  %v731_v16 = vld [vmem:[%s1047_s1 + $0x60] sm:$0xff]   ;;  %v735_v20 = vld [vmem:[%s1047_s1 + $0x68] sm:$0xff]  }
   0x6   :  { %677 = vmatprep.subr.bf16.mxu1 %v720_v5  ;;  %v728_v13 = vld [vmem:[%s1047_s1 + $0xd8] sm:$0xff]   ;;  %v732_v17 = vld [vmem:[%s1047_s1 + $0xe0] sm:$0xff]   ;;  %v736_v21 = vld [vmem:[%s1047_s1 + $0xe8] sm:$0xff]  }
   0x7   :  { %v729_v14 = vld [vmem:[%s1047_s1 + $0x18] sm:$0xff]   ;;  %v733_v18 = vld [vmem:[%s1047_s1 + $0x20] sm:$0xff]   ;;  %v737_v22 = vld [vmem:[%s1047_s1 + $0x28] sm:$0xff]  }
   0x8   :  { %638 = vmatpush3.bf16.msra.mxu0 %v721_v6  ;;  %v730_v15 = vld [vmem:[%s1047_s1 + $0x98] sm:$0xff]   ;;  %v734_v19 = vld [vmem:[%s1047_s1 + $0xa0] sm:$0xff]   ;;  %v738_v23 = vld [vmem:[%s1047_s1 + $0xa8] sm:$0xff]  }
   0x9   :  { %678 = vmatpush3.bf16.msra.mxu1 %v722_v7  ;;  %639 = vmatprep.subr.bf16.mxu0 %v723_v8  ;;  %v739_v24 = vld [vmem:[%s1047_s1 + $0x70] sm:$0xff]   ;;  %v743_v28 = vld [vmem:[%s1047_s1 + $0x78] sm:$0xff]  }
   0xa   :  { %679 = vmatprep.subr.bf16.mxu1 %v724_v9  ;;  %v740_v25 = vld [vmem:[%s1047_s1 + $0xf0] sm:$0xff]   ;;  %v744_v29 = vld [vmem:[%s1047_s1 + $0xf8] sm:$0xff]  }
   0xb   :  { %v741_v26 = vld [vmem:[%s1047_s1 + $0x30] sm:$0xff]   ;;  %v745_v30 = vld [vmem:[%s1047_s1 + $0x38] sm:$0xff]  }
   0xc   :  { %640 = vmatpush3.bf16.msra.mxu0 %v725_v10  ;;  %v742_v27 = vld [vmem:[%s1047_s1 + $0xb0] sm:$0xff]   ;;  %v746_v31 = vld [vmem:[%s1047_s1 + $0xb8] sm:$0xff]  }
   0xd   :  { %680 = vmatpush3.bf16.msra.mxu1 %v726_v11  ;;  %641 = vmatprep.subr.bf16.mxu0 %v727_v12  ;;  %v747_v32 = vld [vmem:[%s1048_s0] ss:$16 sps:$4 sm:$0xff]   ;;  %v749_v33 = vld [vmem:[%s1048_s0 + $0x4] ss:$16 sps:$4 sm:$0xff]   ;;  %v750_v34 = vld [vmem:[%s1048_s0 + $0x8] ss:$16 sps:$4 sm:$0xff]  }
   0xe   :  { %681 = vmatprep.subr.bf16.mxu1 %v728_v13  ;;  %v752_v35 = vld [vmem:[%s1048_s0 + $0xc] ss:$16 sps:$4 sm:$0xff]   ;;  %398 = vmatprep.mubr.bf16.mxu0 %v749_v33  ;;  %v753_v36 = vld [vmem:[%s1048_s0 + $0x24] ss:$16 sps:$4 sm:$0xff]   ;;  %v757_v38 = vld [vmem:[%s1048_s0 + $0x20] ss:$16 sps:$4 sm:$0xff]  }
   0xf   :  { %463 = vmatprep.mubr.bf16.mxu1 %v752_v35  ;;  %v755_v37 = vld [vmem:[%s1048_s0 + $0x2c] ss:$16 sps:$4 sm:$0xff]   ;;  %v758_v39 = vld [vmem:[%s1048_s0 + $0x28] ss:$16 sps:$4 sm:$0xff]   ;;  %v759_v40 = vld [vmem:[%s1048_s0 + $0x44] ss:$16 sps:$4 sm:$0xff]  }
  0x10   :  { %642 = vmatpush3.bf16.msra.mxu0 %v729_v14  ;;  %v761_v41 = vld [vmem:[%s1048_s0 + $0x4c] ss:$16 sps:$4 sm:$0xff]   ;;  %v763_v42 = vld [vmem:[%s1048_s0 + $0x40] ss:$16 sps:$4 sm:$0xff]   ;;  %v764_v43 = vld [vmem:[%s1048_s0 + $0x48] ss:$16 sps:$4 sm:$0xff]  }
  0x11   :  { %682 = vmatpush3.bf16.msra.mxu1 %v730_v15  ;;  %643 = vmatprep.subr.bf16.mxu0 %v731_v16  ;;  %v765_v44 = vld [vmem:[%s1048_s0 + $0x64] ss:$16 sps:$4 sm:$0xff]   ;;  %v767_v45 = vld [vmem:[%s1048_s0 + $0x6c] ss:$16 sps:$4 sm:$0xff]   ;;  %v769_v46 = vld [vmem:[%s1048_s0 + $0x60] ss:$16 sps:$4 sm:$0xff]  }
  0x12   :  { %683 = vmatprep.subr.bf16.mxu1 %v732_v17  ;;  %v770_v47 = vld [vmem:[%s1048_s0 + $0x68] ss:$16 sps:$4 sm:$0xff]  }
  0x14   :  { %644 = vmatpush3.bf16.msra.mxu0 %v733_v18 }
  0x15   :  { %684 = vmatpush3.bf16.msra.mxu1 %v734_v19  ;;  %645 = vmatprep.subr.bf16.mxu0 %v735_v20 }
  0x16   :  { %685 = vmatprep.subr.bf16.mxu1 %v736_v21 }
  0x18   :  { %646 = vmatpush3.bf16.msra.mxu0 %v737_v22 }
  0x19   :  { %686 = vmatpush3.bf16.msra.mxu1 %v738_v23  ;;  %647 = vmatprep.subr.bf16.mxu0 %v739_v24 }
  0x1a   :  { %687 = vmatprep.subr.bf16.mxu1 %v740_v25 }
  0x1c   :  { %648 = vmatpush3.bf16.msra.mxu0 %v741_v26 }
  0x1d   :  { %688 = vmatpush3.bf16.msra.mxu1 %v742_v27  ;;  %649 = vmatprep.subr.bf16.mxu0 %v743_v28 }
  0x1e   :  { %689 = vmatprep.subr.bf16.mxu1 %v744_v29 }
  0x20   :  { %650 = vmatpush3.bf16.msra.mxu0 %v745_v30 }
  0x21   :  { %690 = vmatpush3.bf16.msra.mxu1 %v746_v31 }
  0x23   :  { %399 = vmatmul.mubr.bf16.vlgmr.msra.gmra.mrb[0].mxu0 %v747_v32 }
  0x24   :  { %464 = vmatmul.mubr.bf16.vlgmr.msra.gmra.mrb[0].mxu1 %v750_v34  ;;  %406 = vmatprep.mubr.bf16.mxu0 %v753_v36 }
  0x25   :  { %471 = vmatprep.mubr.bf16.mxu1 %v755_v37 }
  0x2b   :  { %407 = vmatmul.mubr.bf16.gmra.mrb[4].mxu0 %v757_v38 }
  0x2c   :  { %472 = vmatmul.mubr.bf16.gmra.mrb[4].mxu1 %v758_v39  ;;  %414 = vmatprep.mubr.bf16.mxu0 %v759_v40 }
  0x2d   :  { %479 = vmatprep.mubr.bf16.mxu1 %v761_v41 }
  0x33   :  { %415 = vmatmul.mubr.bf16.gmra.mrb[8].mxu0 %v763_v42 }
  0x34   :  { %480 = vmatmul.mubr.bf16.gmra.mrb[8].mxu1 %v764_v43  ;;  %422 = vmatprep.mubr.bf16.mxu0 %v765_v44 }
  0x35   :  { %487 = vmatprep.mubr.bf16.mxu1 %v767_v45 }
  0x3b   :  { %423 = vmatmul.mubr.bf16.gmra.mrb[12].mxu0 %v769_v46 }
  0x3c   :  { %488 = vmatmul.mubr.bf16.gmra.mrb[12].mxu1 %v770_v47 }
  0xf6   :  { %v651_v48 = vpop.f32.mrb[0].mxu0 }
  0xf7   :  { %v691_v49 = vpop.f32.mrb[0].mxu1  ;;  %v652_v50 = vpop.f32.mrb[1].mxu0 }
  0xf8   :  { %v653_v51 = vadd.f32 %v652_v50, %v651_v48  ;;  %v692_v52 = vpop.f32.mrb[1].mxu1  ;;  %v654_v53 = vpop.f32.mrb[2].mxu0 }
  0xf9   :  { %v693_v54 = vadd.f32 %v692_v52, %v691_v49  ;;  %v694_v55 = vpop.f32.mrb[2].mxu1  ;;  %v655_v56 = vpop.f32.mrb[3].mxu0 }
  0xfa   :  { %v656_v57 = vadd.f32 %v655_v56, %v654_v53  ;;  %v695_v58 = vpop.f32.mrb[3].mxu1 }
  0xfb   :  { %v466_v59 = vadd.f32 %v693_v54, %v653_v51  ;;  %v696_v60 = vadd.f32 %v695_v58, %v694_v55 }
  0xfd   :  { %571 = vst.msk [vmem:[%s1049_s2] sm:$0xff] %vm496_vm0, %v466_v59  ;;  %v469_v61 = vadd.f32 %v696_v60, %v656_v57  ;;  %v497_v62 = vsel %vm496_vm0, %v466_v59, 0.0  ;;  %v530_v11 = vmul.f32 %v466_v59, %v466_v59 }
  0xfe   :  { %498 = vadd.xlane.f32.xlu0 %v497_v62  ;;  %v657_v63 = vpop.f32.mrb[4].mxu0 }
  0xff   :  { %572 = vst.msk [vmem:[%s1049_s2 + $0x8] sm:$0xff] %vm496_vm0, %v469_v61  ;;  %v697_v0 = vpop.f32.mrb[4].mxu1  ;;  %v658_v1 = vpop.f32.mrb[5].mxu0  ;;  %v531_v2 = vmul.f32 %v469_v61, %v469_v61  ;;  %v500_v10 = vsel %vm496_vm0, %v469_v61, 0.0  ;;  %v538_v18 = vsel %vm496_vm0, %v530_v11, 0.0 }
 0x100   :  { %v659_v3 = vadd.f32 %v658_v1, %v657_v63  ;;  %v698_v4 = vpop.f32.mrb[5].mxu1  ;;  %v660_v5 = vpop.f32.mrb[6].mxu0 }
 0x101   :  { %v699_v6 = vadd.f32 %v698_v4, %v697_v0  ;;  %v700_v7 = vpop.f32.mrb[6].mxu1  ;;  %v661_v8 = vpop.f32.mrb[7].mxu0  ;;  %v541_v9 = vsel %vm496_vm0, %v531_v2, 0.0 }
 0x102   :  { %v662_v12 = vadd.f32 %v661_v8, %v660_v5  ;;  %v701_v13 = vpop.f32.mrb[7].mxu1  ;;  %542 = vadd.xlane.f32.xlu1 %v541_v9  ;;  %501 = vadd.xlane.f32.xlu0 %v500_v10 }
 0x103   :  { %v474_v14 = vadd.f32 %v699_v6, %v659_v3  ;;  %v702_v15 = vadd.f32 %v701_v13, %v700_v7 }
 0x105   :  { %573 = vst.msk [vmem:[%s1049_s2 + $0x10] sm:$0xff] %vm496_vm0, %v474_v14  ;;  %v477_v16 = vadd.f32 %v702_v15, %v662_v12  ;;  %v503_v17 = vsel %vm496_vm0, %v474_v14, 0.0  ;;  %v532_v19 = vmul.f32 %v474_v14, %v474_v14 }
 0x106   :  { %504 = vadd.xlane.f32.xlu1 %v503_v17  ;;  %539 = vadd.xlane.f32.xlu0 %v538_v18  ;;  %v663_v20 = vpop.f32.mrb[8].mxu0 }
 0x107   :  { %574 = vst.msk [vmem:[%s1049_s2 + $0x18] sm:$0xff] %vm496_vm0, %v477_v16  ;;  %v703_v21 = vpop.f32.mrb[8].mxu1  ;;  %v664_v22 = vpop.f32.mrb[9].mxu0  ;;  %v506_v29 = vsel %vm496_vm0, %v477_v16, 0.0  ;;  %v544_v30 = vsel %vm496_vm0, %v532_v19, 0.0  ;;  %v533_v31 = vmul.f32 %v477_v16, %v477_v16 }
 0x108   :  { %v665_v23 = vadd.f32 %v664_v22, %v663_v20  ;;  %v704_v24 = vpop.f32.mrb[9].mxu1  ;;  %v666_v25 = vpop.f32.mrb[10].mxu0 }
 0x109   :  { %v705_v26 = vadd.f32 %v704_v24, %v703_v21  ;;  %v706_v27 = vpop.f32.mrb[10].mxu1  ;;  %v667_v28 = vpop.f32.mrb[11].mxu0  ;;  %v547_v37 = vsel %vm496_vm0, %v533_v31, 0.0 }
 0x10a   :  { %v668_v32 = vadd.f32 %v667_v28, %v666_v25  ;;  %v707_v33 = vpop.f32.mrb[11].mxu1  ;;  %507 = vadd.xlane.f32.xlu1 %v506_v29  ;;  %545 = vadd.xlane.f32.xlu0 %v544_v30 }
 0x10b   :  { %v482_v34 = vadd.f32 %v705_v26, %v665_v23  ;;  %v708_v35 = vadd.f32 %v707_v33, %v706_v27 }
 0x10d   :  { %575 = vst.msk [vmem:[%s1049_s2 + $0x20] sm:$0xff] %vm496_vm0, %v482_v34  ;;  %v485_v36 = vadd.f32 %v708_v35, %v668_v32  ;;  %v509_v38 = vsel %vm496_vm0, %v482_v34, 0.0  ;;  %v534_v39 = vmul.f32 %v482_v34, %v482_v34 }
 0x10e   :  { %548 = vadd.xlane.f32.xlu1 %v547_v37  ;;  %510 = vadd.xlane.f32.xlu0 %v509_v38  ;;  %v669_v40 = vpop.f32.mrb[12].mxu0 }
 0x10f   :  { %576 = vst.msk [vmem:[%s1049_s2 + $0x28] sm:$0xff] %vm496_vm0, %v485_v36  ;;  %v709_v41 = vpop.f32.mrb[12].mxu1  ;;  %v670_v42 = vpop.f32.mrb[13].mxu0  ;;  %v550_v43 = vsel %vm496_vm0, %v534_v39, 0.0  ;;  %v512_v50 = vsel %vm496_vm0, %v485_v36, 0.0  ;;  %v535_v51 = vmul.f32 %v485_v36, %v485_v36 }
 0x110   :  { %v671_v44 = vadd.f32 %v670_v42, %v669_v40  ;;  %v710_v45 = vpop.f32.mrb[13].mxu1  ;;  %v672_v46 = vpop.f32.mrb[14].mxu0 }
 0x111   :  { %v711_v47 = vadd.f32 %v710_v45, %v709_v41  ;;  %v712_v48 = vpop.f32.mrb[14].mxu1  ;;  %v673_v49 = vpop.f32.mrb[15].mxu0  ;;  %v553_v57 = vsel %vm496_vm0, %v535_v51, 0.0 }
 0x112   :  { %v674_v52 = vadd.f32 %v673_v49, %v672_v46  ;;  %v713_v53 = vpop.f32.mrb[15].mxu1  ;;  %513 = vadd.xlane.f32.xlu1 %v512_v50  ;;  %551 = vadd.xlane.f32.xlu0 %v550_v43 }
 0x113   :  { %v490_v54 = vadd.f32 %v711_v47, %v671_v44  ;;  %v714_v55 = vadd.f32 %v713_v53, %v712_v48 }
 0x115   :  { %577 = vst.msk [vmem:[%s1049_s2 + $0x30] sm:$0xff] %vm496_vm0, %v490_v54  ;;  %v493_v56 = vadd.f32 %v714_v55, %v674_v52  ;;  %v515_v58 = vsel %vm496_vm0, %v490_v54, 0.0  ;;  %v536_v59 = vmul.f32 %v490_v54, %v490_v54 }
 0x116   :  { %554 = vadd.xlane.f32.xlu1 %v553_v57  ;;  %516 = vadd.xlane.f32.xlu0 %v515_v58 }
 0x117   :  { %578 = vst.msk [vmem:[%s1049_s2 + $0x38] sm:$0xff] %vm496_vm0, %v493_v56  ;;  %v556_v60 = vsel %vm496_vm0, %v536_v59, 0.0  ;;  %v518_v61 = vsel %vm496_vm0, %v493_v56, 0.0  ;;  %v537_v62 = vmul.f32 %v493_v56, %v493_v56 }
 0x119   :  { %v559_v63 = vsel %vm496_vm0, %v537_v62, 0.0 }
 0x11a   :  { %519 = vadd.xlane.f32.xlu1 %v518_v61  ;;  %557 = vadd.xlane.f32.xlu0 %v556_v60 }
 0x11e   :  { %560 = vadd.xlane.f32.xlu1 %v559_v63 }
 0x18b   :  { %v499_v0 = vpop.xlane.xlu0 %498 }
 0x18c   :  { %522 = vst.msk [vmem:[%s1050_s3] sm:$0xff] %vm521_vm1, %v499_v0 }
 0x18f   :  { %v543_v1 = vpop.xlane.xlu1 %542  ;;  %v502_v2 = vpop.xlane.xlu0 %501 }
 0x190   :  { %523 = vst.msk [vmem:[%s1050_s3 + $0x8] sm:$0xff] %vm521_vm1, %v502_v2 }
 0x191   :  { %564 = vst.msk [vmem:[%s1050_s3 + $0x8] sm:$0xff] %vm562_vm2, %v543_v1 }
 0x193   :  { %v505_v3 = vpop.xlane.xlu1 %504  ;;  %v540_v4 = vpop.xlane.xlu0 %539 }
 0x194   :  { %524 = vst.msk [vmem:[%s1050_s3 + $0x10] sm:$0xff] %vm521_vm1, %v505_v3 }
 0x195   :  { %563 = vst.msk [vmem:[%s1050_s3] sm:$0xff] %vm562_vm2, %v540_v4 }
 0x197   :  { %v508_v5 = vpop.xlane.xlu1 %507  ;;  %v546_v6 = vpop.xlane.xlu0 %545 }
 0x198   :  { %525 = vst.msk [vmem:[%s1050_s3 + $0x18] sm:$0xff] %vm521_vm1, %v508_v5 }
 0x199   :  { %565 = vst.msk [vmem:[%s1050_s3 + $0x10] sm:$0xff] %vm562_vm2, %v546_v6 }
 0x19b   :  { %v549_v7 = vpop.xlane.xlu1 %548  ;;  %v511_v8 = vpop.xlane.xlu0 %510 }
 0x19c   :  { %566 = vst.msk [vmem:[%s1050_s3 + $0x18] sm:$0xff] %vm562_vm2, %v549_v7 }
 0x19d   :  { %526 = vst.msk [vmem:[%s1050_s3 + $0x20] sm:$0xff] %vm521_vm1, %v511_v8 }
 0x19f   :  { %v514_v9 = vpop.xlane.xlu1 %513  ;;  %v552_v10 = vpop.xlane.xlu0 %551 }
 0x1a0   :  { %527 = vst.msk [vmem:[%s1050_s3 + $0x28] sm:$0xff] %vm521_vm1, %v514_v9 }
 0x1a1   :  { %567 = vst.msk [vmem:[%s1050_s3 + $0x20] sm:$0xff] %vm562_vm2, %v552_v10 }
 0x1a3   :  { %v555_v11 = vpop.xlane.xlu1 %554  ;;  %v517_v12 = vpop.xlane.xlu0 %516 }
 0x1a4   :  { %568 = vst.msk [vmem:[%s1050_s3 + $0x28] sm:$0xff] %vm562_vm2, %v555_v11 }
 0x1a5   :  { %528 = vst.msk [vmem:[%s1050_s3 + $0x30] sm:$0xff] %vm521_vm1, %v517_v12 }
 0x1a7   :  { %v520_v13 = vpop.xlane.xlu1 %519  ;;  %v558_v14 = vpop.xlane.xlu0 %557 }
 0x1a8   :  { %529 = vst.msk [vmem:[%s1050_s3 + $0x38] sm:$0xff] %vm521_vm1, %v520_v13 }
 0x1a9   :  { %569 = vst.msk [vmem:[%s1050_s3 + $0x30] sm:$0xff] %vm562_vm2, %v558_v14 }
 0x1ab   :  { %v561_v15 = vpop.xlane.xlu1 %560 }
 0x1ac   :  { %570 = vst.msk [vmem:[%s1050_s3 + $0x38] sm:$0xff] %vm562_vm2, %v561_v15 }

</bundles_post_ra>
